<compile_context>
chip_gen: v5e
topology: v5e:2x2
jax: 0.10.0
libtpu: 0.0.40
codegen_flags: <defaults>
</compile_context>

<pallas_src>
import functools

import jax
import jax.numpy as jnp
from jax import lax
from jax.experimental import pallas as pl
from jax.experimental.pallas import tpu as pltpu

IN_DIM = 64 * 7 * 7  # 3136, fixed by the module


def _round_up(n, m):
    return ((n + m - 1) // m) * m


def _option_actor_kernel(x_ref, w1_ref, b1_ref, w2_ref, b2_ref, o_ref):
    # fc1: (TB, K) . (H, K) contracted over K -> (TB, H).  bf16 MXU inputs,
    # f32 accumulation.  The casts are VPU work hidden under the x-tile DMA.
    x = x_ref[...].astype(jnp.bfloat16)
    w1 = w1_ref[...].astype(jnp.bfloat16)
    h = lax.dot_general(
        x, w1,
        dimension_numbers=(((1,), (1,)), ((), ())),
        preferred_element_type=jnp.float32)
    h = jnp.maximum(h + b1_ref[...], 0.0)            # bias + ReLU on VPU (f32)
    # optionfc: (TB, H) . (N, H) contracted over H -> (TB, N).  Tiny; keep f32.
    z = lax.dot_general(
        h, w2_ref[...],
        dimension_numbers=(((1,), (1,)), ((), ())),
        preferred_element_type=jnp.float32)
    o_ref[...] = (z + b2_ref[...]).astype(o_ref.dtype)


@functools.partial(jax.jit, static_argnames=("block_b",))
def procgen_option_actor_forward(x, w1, b1, w2, b2, *, block_b=512):
    """Forward pass of ProcGenOptionActor.

    x : (B, 3136) f32 state representation
    w1: (H, 3136)  fc1.weight      (PyTorch (out, in) layout, lane-dense)
    b1: (H,)       fc1.bias
    w2: (N, H)     optionfc.weight (PyTorch (out, in) layout)
    b2: (N,)       optionfc.bias
    Returns (B, N) option logits (f32).
    """
    B, K = x.shape
    H = w1.shape[0]
    N = w2.shape[0]
    assert K == IN_DIM and w1.shape[1] == K and w2.shape[1] == H

    x_f = x.astype(jnp.float32)
    w1_f = w1.astype(jnp.float32)
    b1_2d = b1.reshape(1, H).astype(jnp.float32)
    w2_f = w2.astype(jnp.float32)
    b2_2d = b2.reshape(1, N).astype(jnp.float32)

    # Batch tile: multiple of 8 sublanes; pad B only if the grid needs it.
    tb = min(block_b, _round_up(B, 8))
    b_pad = _round_up(B, tb)
    if b_pad != B:
        x_f = jnp.pad(x_f, ((0, b_pad - B), (0, 0)))
    grid = (b_pad // tb,)

    flops = 2 * b_pad * K * H + 2 * b_pad * H * N
    bytes_accessed = 4 * (x_f.size + w1_f.size + b1_2d.size
                          + w2_f.size + b2_2d.size + b_pad * N)

    out = pl.pallas_call(
        _option_actor_kernel,
        out_shape=jax.ShapeDtypeStruct((b_pad, N), jnp.float32),
        grid=grid,
        in_specs=[
            pl.BlockSpec((tb, K), lambda i: (i, 0)),   # x: streamed per batch tile
            pl.BlockSpec((H, K), lambda i: (0, 0)),    # w1: fetched once, VMEM-resident
            pl.BlockSpec((1, H), lambda i: (0, 0)),    # b1
            pl.BlockSpec((N, H), lambda i: (0, 0)),    # w2
            pl.BlockSpec((1, N), lambda i: (0, 0)),    # b2
        ],
        out_specs=pl.BlockSpec((tb, N), lambda i: (i, 0)),
        compiler_params=pltpu.CompilerParams(
            dimension_semantics=("parallel",),         # megacore-shard the batch grid
            vmem_limit_bytes=32 * 1024 * 1024,         # fits double-buffered 512-row tiles
        ),
        cost_estimate=pl.CostEstimate(
            flops=flops, transcendentals=0, bytes_accessed=bytes_accessed),
    )(x_f, w1_f, b1_2d, w2_f, b2_2d)

    return out[:B]


def init_params(key, hidden_dim, num_options):
    """Deterministic PyTorch-style Linear init (uniform +-1/sqrt(fan_in))."""
    k1, k2, k3, k4 = jax.random.split(key, 4)
    bound1 = 1.0 / (IN_DIM ** 0.5)
    bound2 = 1.0 / (hidden_dim ** 0.5)
    w1 = jax.random.uniform(k1, (hidden_dim, IN_DIM), jnp.float32, -bound1, bound1)
    b1 = jax.random.uniform(k2, (hidden_dim,), jnp.float32, -bound1, bound1)
    w2 = jax.random.uniform(k3, (num_options, hidden_dim), jnp.float32, -bound2, bound2)
    b2 = jax.random.uniform(k4, (num_options,), jnp.float32, -bound2, bound2)
    return w1, b1, w2, b2


def reference_forward(x, w1, b1, w2, b2):
    h = jnp.maximum(x @ w1.T + b1, 0.0)
    return h @ w2.T + b2


if __name__ == "__main__":
    key = jax.random.PRNGKey(0)
    kx, kp = jax.random.split(key)

    batch = 2
    hidden_dim = 32
    num_options = 8

    x = jax.random.normal(kx, (batch, IN_DIM), jnp.float32)
    w1, b1, w2, b2 = init_params(kp, hidden_dim, num_options)

    out = procgen_option_actor_forward(x, w1, b1, w2, b2)
    out = jax.block_until_ready(out)
    assert out.shape == (batch, num_options)
    assert bool(jnp.all(jnp.isfinite(out)))

    # Semantic check vs the full-f32 module forward (bf16 MXU inputs in the
    # kernel give ~1e-3 absolute deviation on ~0.2-magnitude logits).
    ref_f32 = reference_forward(x, w1, b1, w2, b2)
    assert jnp.allclose(out, ref_f32, atol=5e-2, rtol=5e-2)

    print("KERNEL_OK")
</pallas_src>

<mosaic_0001>
module attributes {stable_mosaic.version = 11 : i64} {
  func.func @_option_actor_kernel(%arg0: i32, %arg1: memref<8x3136xf32, #tpu.memory_space<vmem>>, %arg2: memref<32x3136xf32, #tpu.memory_space<vmem>>, %arg3: memref<1x32xf32, #tpu.memory_space<vmem>>, %arg4: memref<8x32xf32, #tpu.memory_space<vmem>>, %arg5: memref<1x8xf32, #tpu.memory_space<vmem>>, %arg6: memref<8x8xf32, #tpu.memory_space<vmem>>) attributes {dimension_semantics = [#tpu.dimension_semantics<parallel>], iteration_bounds = array<i64: 1>, scalar_prefetch = 0 : i64, scratch_operands = 0 : i64, tpu.core_type = #tpu.core_type<tc>, window_params = [{transform_indices = @transform_0, window_bounds = array<i64: 8, 3136>}, {pipeline_mode = #tpu.pipeline_mode<synchronous>, transform_indices = @transform_1, window_bounds = array<i64: 32, 3136>}, {pipeline_mode = #tpu.pipeline_mode<synchronous>, transform_indices = @transform_2, window_bounds = array<i64: 1, 32>}, {pipeline_mode = #tpu.pipeline_mode<synchronous>, transform_indices = @transform_3, window_bounds = array<i64: 8, 32>}, {pipeline_mode = #tpu.pipeline_mode<synchronous>, transform_indices = @transform_4, window_bounds = array<i64: 1, 8>}, {transform_indices = @transform_5, window_bounds = array<i64: 8, 8>}]} {
    %c0 = arith.constant 0 : index
    %c0_0 = arith.constant 0 : index
    %0 = vector.load %arg1[%c0, %c0_0] : memref<8x3136xf32, #tpu.memory_space<vmem>>, vector<8x3136xf32>
    %1 = arith.truncf %0 : vector<8x3136xf32> to vector<8x3136xbf16>
    %c0_1 = arith.constant 0 : index
    %c0_2 = arith.constant 0 : index
    %2 = vector.load %arg2[%c0_1, %c0_2] : memref<32x3136xf32, #tpu.memory_space<vmem>>, vector<32x3136xf32>
    %3 = arith.truncf %2 : vector<32x3136xf32> to vector<32x3136xbf16>
    %cst = arith.constant dense<0.000000e+00> : vector<8x32xf32>
    %4 = tpu.matmul %1, %3, %cst {dimension_numbers = #tpu.dot_dimension_numbers<[1], [1], [0], [0], [0, 0, 1, 0], [], []>} : vector<8x3136xbf16>, vector<32x3136xbf16>, vector<8x32xf32> -> vector<8x32xf32>
    %c0_3 = arith.constant 0 : index
    %c0_4 = arith.constant 0 : index
    %5 = vector.load %arg3[%c0_3, %c0_4] : memref<1x32xf32, #tpu.memory_space<vmem>>, vector<1x32xf32>
    %6 = vector.broadcast %5 : vector<1x32xf32> to vector<8x32xf32>
    %7 = arith.addf %4, %6 : vector<8x32xf32>
    %cst_5 = arith.constant 0.000000e+00 : f32
    %8 = vector.broadcast %cst_5 : f32 to vector<8x32xf32>
    %9 = arith.maximumf %7, %8 : vector<8x32xf32>
    %c0_6 = arith.constant 0 : index
    %c0_7 = arith.constant 0 : index
    %10 = vector.load %arg4[%c0_6, %c0_7] : memref<8x32xf32, #tpu.memory_space<vmem>>, vector<8x32xf32>
    %cst_8 = arith.constant dense<0.000000e+00> : vector<8x8xf32>
    %11 = tpu.matmul %9, %10, %cst_8 {dimension_numbers = #tpu.dot_dimension_numbers<[1], [1], [0], [0], [0, 0, 1, 0], [], []>} : vector<8x32xf32>, vector<8x32xf32>, vector<8x8xf32> -> vector<8x8xf32>
    %c0_9 = arith.constant 0 : index
    %c0_10 = arith.constant 0 : index
    %12 = vector.load %arg5[%c0_9, %c0_10] : memref<1x8xf32, #tpu.memory_space<vmem>>, vector<1x8xf32>
    %13 = vector.broadcast %12 : vector<1x8xf32> to vector<8x8xf32>
    %14 = arith.addf %11, %13 : vector<8x8xf32>
    %c0_11 = arith.constant 0 : index
    %c0_12 = arith.constant 0 : index
    %15 = vector.load %arg6[%c0_11, %c0_12] : memref<8x8xf32, #tpu.memory_space<vmem>>, vector<8x8xf32>
    tpu.vector_store %arg6[%c0_11, %c0_12], %14 {strides = array<i32>} : memref<8x8xf32, #tpu.memory_space<vmem>>, vector<8x8xf32>,
    return
  }
  func.func @transform_0(%arg0: i32) -> (i32, i32) {
    %c0_i32 = arith.constant 0 : i32
    %c0_i32_0 = arith.constant 0 : i32
    return %arg0, %c0_i32 : i32, i32
  }
  func.func @transform_1(%arg0: i32) -> (i32, i32) {
    %c0_i32 = arith.constant 0 : i32
    %c0_i32_0 = arith.constant 0 : i32
    %c0_i32_1 = arith.constant 0 : i32
    return %c0_i32, %c0_i32_0 : i32, i32
  }
  func.func @transform_2(%arg0: i32) -> (i32, i32) {
    %c0_i32 = arith.constant 0 : i32
    %c0_i32_0 = arith.constant 0 : i32
    %c0_i32_1 = arith.constant 0 : i32
    return %c0_i32, %c0_i32_0 : i32, i32
  }
  func.func @transform_3(%arg0: i32) -> (i32, i32) {
    %c0_i32 = arith.constant 0 : i32
    %c0_i32_0 = arith.constant 0 : i32
    %c0_i32_1 = arith.constant 0 : i32
    return %c0_i32, %c0_i32_0 : i32, i32
  }
  func.func @transform_4(%arg0: i32) -> (i32, i32) {
    %c0_i32 = arith.constant 0 : i32
    %c0_i32_0 = arith.constant 0 : i32
    %c0_i32_1 = arith.constant 0 : i32
    return %c0_i32, %c0_i32_0 : i32, i32
  }
  func.func @transform_5(%arg0: i32) -> (i32, i32) {
    %c0_i32 = arith.constant 0 : i32
    %c0_i32_0 = arith.constant 0 : i32
    return %arg0, %c0_i32 : i32, i32
  }
}

</mosaic_0001>

<bundles_post_ra>
// kernel: procgen_option_actor_forward.1
= control target key start
LH: loop header
LB: loop body
LE: loop exit
PB: predicated region body
PF: predicated region fallthrough
CT: control target
= control target key end

     0   :  { %10 = vsyncpa [#allocation3], 0  ;;  %s650_s21 = smov [#allocation2]   ;;  %s651_s23 = smov 3200   ;;  %s778_s0 = inlined_call_operand.vmem [shape: f32[8,3136], index: 0, kind: input, shape index: {}]   ;;  %s779_s1 = inlined_call_operand.hbm [shape: f32[32,3136], index: 1, kind: input, shape index: {}]   ;;  %s780_s2 = inlined_call_operand.vmem [shape: f32[1,32], index: 2, kind: input, shape index: {}]   ;;  %s781_s3 = inlined_call_operand.vmem [shape: f32[8,32], index: 3, kind: input, shape index: {}]   ;;  %s782_s4 = inlined_call_operand.vmem [shape: f32[1,8], index: 4, kind: input, shape index: {}]   ;;  %s783_s5 = inlined_call_operand.vmem [shape: f32[8,8], index: 5, kind: output, shape index: {}]  }
   0x1   :  { %s17_s20 = sshll.u32 %s779_s1, 4  ;;  %s19_s22 = sshll.u32 %s650_s21, 4  ;;  %s18_s20 = int_to_ptr.hbm [resolvable:$true] %s17_s20  ;;  %s20_s22 = int_to_ptr.vmem [resolvable:$true] %s19_s22 }
   0x2   :  { %s652_s24 = smov 200  }
   0x3   :  { %25 = dma.hbm_to_vmem [thread:$0]  %s18_s20, 12800, %s20_s22, [#allocation3], %s651_s23, %s651_s23, %s652_s24  }
   0x4   :  { %648 = dma.done.wait [#allocation3], 12800  }
   0x5   :  { %649 = vsyncadd [#allocation3], 4294954496  ;;  %v137_v0 = vld [vmem:[#allocation2 + $0x190] sm:$0xff]  ;;  %v162_v1 = vld [vmem:[#allocation2 + $0x258] sm:$0xff]  ;;  %vm241_vm0 = vcmask 523264   ;;  %vm582_vm1 = vcmask 261120  }
   0x6   :  { %v139_v2 = vld [vmem:[#allocation2 + $0x1a0] sm:$0xff]  ;;  %v212_v3 = vpack.c.bf16 %v162_v1, %v137_v0  ;;  %v164_v4 = vld [vmem:[#allocation2 + $0x268] sm:$0xff]  ;;  %v165_v6 = vld [vmem:[#allocation2 + $0x270] sm:$0xff]  ;;  %vm609_vm2 = vcmask 64512  }
   0x7   :  { %v140_v5 = vld [vmem:[#allocation2 + $0x1a8] sm:$0xff]  ;;  %v214_v7 = vpack.c.bf16 %v164_v4, %v139_v2  ;;  %v138_v9 = vld [vmem:[#allocation2 + $0x198] sm:$0xff]  ;;  %v163_v10 = vld [vmem:[#allocation2 + $0x260] sm:$0xff] }
   0x8   :  { %v215_v8 = vpack.c.bf16 %v165_v6, %v140_v5  ;;  %257 = vmatpush.bf16.xpose.msra.mxu0 %v212_v3  ;;  %v213_v11 = vpack.c.bf16 %v163_v10, %v138_v9  ;;  %v87_v12 = vld [vmem:[#allocation2] sm:$0xff]  ;;  %v112_v13 = vld [vmem:[#allocation2 + $0xc8] sm:$0xff]  ;;  %v89_v14 = vld [vmem:[#allocation2 + $0x10] sm:$0xff] }
   0x9   :  { %283 = vmatpush.bf16.xpose.msra.mxu2 %v214_v7  ;;  %v114_v15 = vld [vmem:[#allocation2 + $0xd8] sm:$0xff]  ;;  %v115_v17 = vld [vmem:[#allocation2 + $0xe0] sm:$0xff]  ;;  %v88_v18 = vld [vmem:[#allocation2 + $0x8] sm:$0xff]  ;;  %v187_v22 = vpack.c.bf16 %v112_v13, %v87_v12 }
   0xa   :  { %296 = vmatpush.bf16.xpose.msra.mxu3 %v215_v8  ;;  %270 = vmatpush.bf16.xpose.msra.mxu1 %v213_v11  ;;  %v90_v16 = vld [vmem:[#allocation2 + $0x18] sm:$0xff]  ;;  %v113_v19 = vld [vmem:[#allocation2 + $0xd0] sm:$0xff]  ;;  %v143_v23 = vld [vmem:[#allocation2 + $0x1c0] sm:$0xff]  ;;  %v189_v26 = vpack.c.bf16 %v114_v15, %v89_v14 }
   0xb   :  { %v141_v20 = vld [vmem:[#allocation2 + $0x1b0] sm:$0xff]  ;;  %v166_v21 = vld [vmem:[#allocation2 + $0x278] sm:$0xff]  ;;  %v168_v24 = vld [vmem:[#allocation2 + $0x288] sm:$0xff]  ;;  %v190_v27 = vpack.c.bf16 %v115_v17, %v90_v16  ;;  %v188_v30 = vpack.c.bf16 %v113_v19, %v88_v18 }
   0xc   :  { %v144_v25 = vld [vmem:[#allocation2 + $0x1c8] sm:$0xff]  ;;  %v169_v28 = vld [vmem:[#allocation2 + $0x290] sm:$0xff]  ;;  %v142_v29 = vld [vmem:[#allocation2 + $0x1b8] sm:$0xff]  ;;  %v216_v31 = vpack.c.bf16 %v166_v21, %v141_v20  ;;  %v218_v33 = vpack.c.bf16 %v168_v24, %v143_v23 }
   0xd   :  { %v167_v32 = vld [vmem:[#allocation2 + $0x280] sm:$0xff]  ;;  %v219_v34 = vpack.c.bf16 %v169_v28, %v144_v25  ;;  %v39_v37 = vld [vmem:[%s778_s0 + $0x10] sm:$0xff]  ;;  %v40_v38 = vld [vmem:[%s778_s0 + $0x18] sm:$0xff] }
   0xe   :  { %v37_v35 = vld [vmem:[%s778_s0] sm:$0xff]  ;;  %v217_v36 = vpack.c.bf16 %v167_v32, %v142_v29  ;;  %v38_v39 = vld [vmem:[%s778_s0 + $0x8] sm:$0xff]  ;;  %v93_v43 = vld [vmem:[#allocation2 + $0x30] sm:$0xff]  ;;  %v64_v46 = vpack.c.bf16 %v39_v37, %v39_v37  ;;  %v65_v47 = vpack.c.bf16 %v40_v38, %v40_v38 }
   0xf   :  { %v91_v40 = vld [vmem:[#allocation2 + $0x20] sm:$0xff]  ;;  %v116_v41 = vld [vmem:[#allocation2 + $0xe8] sm:$0xff]  ;;  %v62_v42 = vpack.c.bf16 %v37_v35, %v37_v35  ;;  %v118_v44 = vld [vmem:[#allocation2 + $0xf8] sm:$0xff]  ;;  %v63_v51 = vpack.c.bf16 %v38_v39, %v38_v39 }
  0x10   :  { %258 = vmatpush.bf16.xpose.msra.mxu0 %v187_v22  ;;  %v94_v45 = vld [vmem:[#allocation2 + $0x38] sm:$0xff]  ;;  %v119_v48 = vld [vmem:[#allocation2 + $0x100] sm:$0xff]  ;;  %v92_v49 = vld [vmem:[#allocation2 + $0x28] sm:$0xff]  ;;  %v191_v55 = vpack.c.bf16 %v116_v41, %v91_v40  ;;  %v193_v59 = vpack.c.bf16 %v118_v44, %v93_v43 }
  0x11   :  { %284 = vmatpush.bf16.xpose.msra.mxu2 %v189_v26  ;;  %v117_v50 = vld [vmem:[#allocation2 + $0xf0] sm:$0xff]  ;;  %v170_v53 = vld [vmem:[#allocation2 + $0x298] sm:$0xff]  ;;  %v147_v54 = vld [vmem:[#allocation2 + $0x1e0] sm:$0xff]  ;;  %v194_v60 = vpack.c.bf16 %v119_v48, %v94_v45 }
  0x12   :  { %297 = vmatpush.bf16.xpose.msra.mxu3 %v190_v27  ;;  %271 = vmatpush.bf16.xpose.msra.mxu1 %v188_v30  ;;  %v145_v52 = vld [vmem:[#allocation2 + $0x1d0] sm:$0xff]  ;;  %v172_v56 = vld [vmem:[#allocation2 + $0x2a8] sm:$0xff]  ;;  %v146_v61 = vld [vmem:[#allocation2 + $0x1d8] sm:$0xff]  ;;  %v192_v63 = vpack.c.bf16 %v117_v50, %v92_v49 }
  0x13   :  { %v148_v57 = vld [vmem:[#allocation2 + $0x1e8] sm:$0xff]  ;;  %v173_v58 = vld [vmem:[#allocation2 + $0x2b0] sm:$0xff]  ;;  %v171_v62 = vld [vmem:[#allocation2 + $0x2a0] sm:$0xff]  ;;  %v220_v0 = vpack.c.bf16 %v170_v53, %v145_v52  ;;  %v222_v1 = vpack.c.bf16 %v172_v56, %v147_v54 }
  0x14   :  { %v223_v2 = vpack.c.bf16 %v173_v58, %v148_v57  ;;  %v221_v3 = vpack.c.bf16 %v171_v62, %v146_v61  ;;  %v95_v4 = vld [vmem:[#allocation2 + $0x40] sm:$0xff]  ;;  %v120_v5 = vld [vmem:[#allocation2 + $0x108] sm:$0xff]  ;;  %v97_v6 = vld [vmem:[#allocation2 + $0x50] sm:$0xff] }
  0x15   :  { %v122_v7 = vld [vmem:[#allocation2 + $0x118] sm:$0xff]  ;;  %v123_v9 = vld [vmem:[#allocation2 + $0x120] sm:$0xff]  ;;  %v96_v10 = vld [vmem:[#allocation2 + $0x48] sm:$0xff]  ;;  %v195_v13 = vpack.c.bf16 %v120_v5, %v95_v4 }
  0x16   :  { %v98_v8 = vld [vmem:[#allocation2 + $0x58] sm:$0xff]  ;;  %v121_v11 = vld [vmem:[#allocation2 + $0x110] sm:$0xff]  ;;  %v41_v12 = vld [vmem:[%s778_s0 + $0x20] sm:$0xff]  ;;  %v197_v17 = vpack.c.bf16 %v122_v7, %v97_v6 }
  0x17   :  { %259 = vmatmul.bf16.vlgmr.msra.gmra.mxu0 %v62_v42  ;;  %v43_v14 = vld [vmem:[%s778_s0 + $0x30] sm:$0xff]  ;;  %v44_v15 = vld [vmem:[%s778_s0 + $0x38] sm:$0xff]  ;;  %v42_v16 = vld [vmem:[%s778_s0 + $0x28] sm:$0xff]  ;;  %v198_v18 = vpack.c.bf16 %v123_v9, %v98_v8  ;;  %v196_v19 = vpack.c.bf16 %v121_v11, %v96_v10  ;;  %v66_v23 = vpack.c.bf16 %v41_v12, %v41_v12 }
  0x18   :  { %309 = vmatpush.bf16.xpose.msrb.mxu0 %v216_v31  ;;  %285 = vmatmul.bf16.vlgmr.msra.gmra.mxu2 %v64_v46  ;;  %v149_v20 = vld [vmem:[#allocation2 + $0x1f0] sm:$0xff]  ;;  %v174_v21 = vld [vmem:[#allocation2 + $0x2b8] sm:$0xff]  ;;  %v151_v22 = vld [vmem:[#allocation2 + $0x200] sm:$0xff]  ;;  %v68_v27 = vpack.c.bf16 %v43_v14, %v43_v14  ;;  %v69_v28 = vpack.c.bf16 %v44_v15, %v44_v15  ;;  %v67_v31 = vpack.c.bf16 %v42_v16, %v42_v16 }
  0x19   :  { %335 = vmatpush.bf16.xpose.msrb.mxu2 %v218_v33  ;;  %298 = vmatmul.bf16.vlgmr.msra.gmra.mxu3 %v65_v47  ;;  %v176_v24 = vld [vmem:[#allocation2 + $0x2c8] sm:$0xff]  ;;  %v177_v26 = vld [vmem:[#allocation2 + $0x2d0] sm:$0xff]  ;;  %v150_v29 = vld [vmem:[#allocation2 + $0x1f8] sm:$0xff]  ;;  %v224_v32 = vpack.c.bf16 %v174_v21, %v149_v20 }
  0x1a   :  { %348 = vmatpush.bf16.xpose.msrb.mxu3 %v219_v34  ;;  %322 = vmatpush.bf16.xpose.msrb.mxu1 %v217_v36  ;;  %v152_v25 = vld [vmem:[#allocation2 + $0x208] sm:$0xff]  ;;  %v175_v30 = vld [vmem:[#allocation2 + $0x2c0] sm:$0xff]  ;;  %v226_v33 = vpack.c.bf16 %v176_v24, %v151_v22  ;;  %v101_v38 = vld [vmem:[#allocation2 + $0x70] sm:$0xff] }
  0x1b   :  { %272 = vmatmul.bf16.vlgmr.msra.gmra.mxu1 %v63_v51  ;;  %v227_v34 = vpack.c.bf16 %v177_v26, %v152_v25  ;;  %v225_v35 = vpack.c.bf16 %v175_v30, %v150_v29  ;;  %v99_v36 = vld [vmem:[#allocation2 + $0x60] sm:$0xff]  ;;  %v124_v37 = vld [vmem:[#allocation2 + $0x128] sm:$0xff]  ;;  %v126_v39 = vld [vmem:[#allocation2 + $0x138] sm:$0xff] }
  0x1c   :  { %v102_v40 = vld [vmem:[#allocation2 + $0x78] sm:$0xff]  ;;  %v127_v41 = vld [vmem:[#allocation2 + $0x140] sm:$0xff]  ;;  %v100_v42 = vld [vmem:[#allocation2 + $0x68] sm:$0xff]  ;;  %v199_v44 = vpack.c.bf16 %v124_v37, %v99_v36  ;;  %v201_v45 = vpack.c.bf16 %v126_v39, %v101_v38 }
  0x1d   :  { %v125_v43 = vld [vmem:[#allocation2 + $0x130] sm:$0xff]  ;;  %v202_v46 = vpack.c.bf16 %v127_v41, %v102_v40  ;;  %v45_v48 = vld [vmem:[%s778_s0 + $0x40] sm:$0xff]  ;;  %v48_v50 = vld [vmem:[%s778_s0 + $0x58] sm:$0xff] }
  0x1e   :  { %v200_v47 = vpack.c.bf16 %v125_v43, %v100_v42  ;;  %v47_v49 = vld [vmem:[%s778_s0 + $0x50] sm:$0xff]  ;;  %v46_v51 = vld [vmem:[%s778_s0 + $0x48] sm:$0xff]  ;;  %v178_v53 = vld [vmem:[#allocation2 + $0x2d8] sm:$0xff] }
  0x1f   :  { %v153_v52 = vld [vmem:[#allocation2 + $0x210] sm:$0xff]  ;;  %v155_v54 = vld [vmem:[#allocation2 + $0x220] sm:$0xff]  ;;  %v180_v56 = vld [vmem:[#allocation2 + $0x2e8] sm:$0xff] }
  0x20   :  { %310 = vmatpush.bf16.xpose.msrb.mxu0 %v191_v55  ;;  %v70_v55 = vpack.c.bf16 %v45_v48, %v45_v48  ;;  %v156_v57 = vld [vmem:[#allocation2 + $0x228] sm:$0xff]  ;;  %v181_v58 = vld [vmem:[#allocation2 + $0x2f0] sm:$0xff]  ;;  %v154_v61 = vld [vmem:[#allocation2 + $0x218] sm:$0xff] }
  0x21   :  { %336 = vmatpush.bf16.xpose.msrb.mxu2 %v193_v59  ;;  %v72_v59 = vpack.c.bf16 %v47_v49, %v47_v49  ;;  %v179_v62 = vld [vmem:[#allocation2 + $0x2e0] sm:$0xff]  ;;  %v128_v5 = vld [vmem:[#allocation2 + $0x148] sm:$0xff]  ;;  %v105_v6 = vld [vmem:[#allocation2 + $0x90] sm:$0xff] }
  0x22   :  { %349 = vmatpush.bf16.xpose.msrb.mxu3 %v194_v60  ;;  %323 = vmatpush.bf16.xpose.msrb.mxu1 %v192_v63  ;;  %v73_v60 = vpack.c.bf16 %v48_v50, %v48_v50  ;;  %v71_v63 = vpack.c.bf16 %v46_v51, %v46_v51  ;;  %v103_v4 = vld [vmem:[#allocation2 + $0x80] sm:$0xff]  ;;  %v130_v7 = vld [vmem:[#allocation2 + $0x158] sm:$0xff]  ;;  %v104_v10 = vld [vmem:[#allocation2 + $0x88] sm:$0xff] }
  0x23   :  { %v106_v8 = vld [vmem:[#allocation2 + $0x98] sm:$0xff]  ;;  %v131_v9 = vld [vmem:[#allocation2 + $0x160] sm:$0xff]  ;;  %v129_v11 = vld [vmem:[#allocation2 + $0x150] sm:$0xff]  ;;  %v203_v12 = vpack.c.bf16 %v128_v5, %v103_v4 }
  0x24   :  { %v206_v14 = vpack.c.bf16 %v131_v9, %v106_v8  ;;  %v204_v15 = vpack.c.bf16 %v129_v11, %v104_v10  ;;  %v49_v16 = vld [vmem:[%s778_s0 + $0x60] sm:$0xff]  ;;  %v157_v20 = vld [vmem:[#allocation2 + $0x230] sm:$0xff]  ;;  %v182_v21 = vld [vmem:[#allocation2 + $0x2f8] sm:$0xff] }
  0x25   :  { %v159_v22 = vld [vmem:[#allocation2 + $0x240] sm:$0xff]  ;;  %v184_v24 = vld [vmem:[#allocation2 + $0x308] sm:$0xff]  ;;  %v185_v26 = vld [vmem:[#allocation2 + $0x310] sm:$0xff] }
  0x26   :  { %v160_v25 = vld [vmem:[#allocation2 + $0x248] sm:$0xff]  ;;  %v158_v29 = vld [vmem:[#allocation2 + $0x238] sm:$0xff]  ;;  %v183_v30 = vld [vmem:[#allocation2 + $0x300] sm:$0xff] }
  0x27   :  { %311 = vmatmul.bf16.vlgmr.msrb.gmra.mxu0 %v66_v23  ;;  %v74_v23 = vpack.c.bf16 %v49_v16, %v49_v16  ;;  %v107_v36 = vld [vmem:[#allocation2 + $0xa0] sm:$0xff]  ;;  %v132_v37 = vld [vmem:[#allocation2 + $0x168] sm:$0xff]  ;;  %v109_v38 = vld [vmem:[#allocation2 + $0xb0] sm:$0xff] }
  0x28   :  { %361 = vmatpush.bf16.xpose.msra.mxu0 %v220_v0  ;;  %337 = vmatmul.bf16.vlgmr.msrb.gmra.mxu2 %v68_v27  ;;  %v228_v0 = vpack.c.bf16 %v178_v53, %v153_v52  ;;  %v134_v39 = vld [vmem:[#allocation2 + $0x178] sm:$0xff]  ;;  %v135_v41 = vld [vmem:[#allocation2 + $0x180] sm:$0xff]  ;;  %v108_v42 = vld [vmem:[#allocation2 + $0xa8] sm:$0xff] }
  0x29   :  { %387 = vmatpush.bf16.xpose.msra.mxu2 %v222_v1  ;;  %350 = vmatmul.bf16.vlgmr.msrb.gmra.mxu3 %v69_v28  ;;  %v230_v1 = vpack.c.bf16 %v180_v56, %v155_v54  ;;  %v110_v40 = vld [vmem:[#allocation2 + $0xb8] sm:$0xff]  ;;  %v133_v43 = vld [vmem:[#allocation2 + $0x170] sm:$0xff]  ;;  %v53_v50 = vld [vmem:[%s778_s0 + $0x80] sm:$0xff] }
  0x2a   :  { %400 = vmatpush.bf16.xpose.msra.mxu3 %v223_v2  ;;  %374 = vmatpush.bf16.xpose.msra.mxu1 %v221_v3  ;;  %v231_v2 = vpack.c.bf16 %v181_v58, %v156_v57  ;;  %v229_v3 = vpack.c.bf16 %v179_v62, %v154_v61  ;;  %v161_v48 = vld [vmem:[#allocation2 + $0x250] sm:$0xff]  ;;  %v186_v49 = vld [vmem:[#allocation2 + $0x318] sm:$0xff]  ;;  %v54_v53 = vld [vmem:[%s778_s0 + $0x88] sm:$0xff] }
  0x2b   :  { %324 = vmatmul.bf16.vlgmr.msrb.gmra.mxu1 %v67_v31  ;;  %v55_v51 = vld [vmem:[%s778_s0 + $0x90] sm:$0xff]  ;;  %v56_v52 = vld [vmem:[%s778_s0 + $0x98] sm:$0xff]  ;;  %v236_v54 = vpack.c.bf16 %v186_v49, %v161_v48  ;;  %v79_v58 = vpack.c.bf16 %v54_v53, %v54_v53  ;;  %v136_v61 = vld [vmem:[#allocation2 + $0x188] sm:$0xff] }
  0x2c   :  { %v80_v56 = vpack.c.bf16 %v55_v51, %v55_v51  ;;  %v81_v57 = vpack.c.bf16 %v56_v52, %v56_v52  ;;  %v61_v8 = vld [vmem:[%s778_s0 + $0xc0] sm:$0xff] }
  0x2d   :  { %v86_v9 = vpack.c.bf16 %v61_v8, %v61_v8 }
  0x30   :  { %362 = vmatpush.bf16.xpose.msra.mxu0 %v195_v13  ;;  %v205_v13 = vpack.c.bf16 %v130_v7, %v105_v6 }
  0x31   :  { %388 = vmatpush.bf16.xpose.msra.mxu2 %v197_v17  ;;  %v51_v17 = vld [vmem:[%s778_s0 + $0x70] sm:$0xff] }
  0x32   :  { %401 = vmatpush.bf16.xpose.msra.mxu3 %v198_v18  ;;  %375 = vmatpush.bf16.xpose.msra.mxu1 %v196_v19  ;;  %v52_v18 = vld [vmem:[%s778_s0 + $0x78] sm:$0xff]  ;;  %v50_v19 = vld [vmem:[%s778_s0 + $0x68] sm:$0xff]  ;;  %v76_v27 = vpack.c.bf16 %v51_v17, %v51_v17 }
  0x33   :  { %v77_v28 = vpack.c.bf16 %v52_v18, %v52_v18  ;;  %v75_v31 = vpack.c.bf16 %v50_v19, %v50_v19 }
  0x37   :  { %363 = vmatmul.bf16.vlgmr.msra.gmra.mxu0 %v70_v55  ;;  %v78_v55 = vpack.c.bf16 %v53_v50, %v53_v50 }
  0x38   :  { %413 = vmatpush.bf16.xpose.msrb.mxu0 %v224_v32  ;;  %389 = vmatmul.bf16.vlgmr.msra.gmra.mxu2 %v72_v59  ;;  %v232_v32 = vpack.c.bf16 %v182_v21, %v157_v20  ;;  %v249_v59 = vsel %vm241_vm0, %v236_v54, 0  ;;  %v622_v20 = vld [vmem:[%s780_s2] ss:$0 sm:$0xff] }
  0x39   :  { %439 = vmatpush.bf16.xpose.msrb.mxu2 %v226_v33  ;;  %402 = vmatmul.bf16.vlgmr.msra.gmra.mxu3 %v73_v60  ;;  %v234_v33 = vpack.c.bf16 %v184_v24, %v159_v22  ;;  %v111_v60 = vld [vmem:[#allocation2 + $0xc0] sm:$0xff] }
  0x3a   :  { %452 = vmatpush.bf16.xpose.msrb.mxu3 %v227_v34  ;;  %426 = vmatpush.bf16.xpose.msrb.mxu1 %v225_v35  ;;  %v235_v34 = vpack.c.bf16 %v185_v26, %v160_v25  ;;  %v233_v35 = vpack.c.bf16 %v183_v30, %v158_v29  ;;  %v211_v62 = vpack.c.bf16 %v136_v61, %v111_v60 }
  0x3b   :  { %376 = vmatmul.bf16.vlgmr.msra.gmra.mxu1 %v71_v63 }
  0x3c   :  { %v246_v63 = vsel %vm241_vm0, %v211_v62, 0 }
  0x40   :  { %414 = vmatpush.bf16.xpose.msrb.mxu0 %v199_v44  ;;  %v207_v44 = vpack.c.bf16 %v132_v37, %v107_v36 }
  0x41   :  { %440 = vmatpush.bf16.xpose.msrb.mxu2 %v201_v45  ;;  %v209_v45 = vpack.c.bf16 %v134_v39, %v109_v38 }
  0x42   :  { %453 = vmatpush.bf16.xpose.msrb.mxu3 %v202_v46  ;;  %427 = vmatpush.bf16.xpose.msrb.mxu1 %v200_v47  ;;  %v210_v46 = vpack.c.bf16 %v135_v41, %v110_v40  ;;  %v208_v47 = vpack.c.bf16 %v133_v43, %v108_v42 }
  0x47   :  { %415 = vmatmul.bf16.vlgmr.msrb.gmra.mxu0 %v74_v23 }
  0x48   :  { %465 = vmatpush.bf16.xpose.msra.mxu0 %v228_v0  ;;  %441 = vmatmul.bf16.vlgmr.msrb.gmra.mxu2 %v76_v27  ;;  %v57_v0 = vld [vmem:[%s778_s0 + $0xa0] sm:$0xff] }
  0x49   :  { %491 = vmatpush.bf16.xpose.msra.mxu2 %v230_v1  ;;  %454 = vmatmul.bf16.vlgmr.msrb.gmra.mxu3 %v77_v28  ;;  %v59_v1 = vld [vmem:[%s778_s0 + $0xb0] sm:$0xff]  ;;  %v82_v4 = vpack.c.bf16 %v57_v0, %v57_v0 }
  0x4a   :  { %504 = vmatpush.bf16.xpose.msra.mxu3 %v231_v2  ;;  %478 = vmatpush.bf16.xpose.msra.mxu1 %v229_v3  ;;  %v60_v2 = vld [vmem:[%s778_s0 + $0xb8] sm:$0xff]  ;;  %v58_v3 = vld [vmem:[%s778_s0 + $0xa8] sm:$0xff]  ;;  %v84_v5 = vpack.c.bf16 %v59_v1, %v59_v1 }
  0x4b   :  { %428 = vmatmul.bf16.vlgmr.msrb.gmra.mxu1 %v75_v31  ;;  %v85_v6 = vpack.c.bf16 %v60_v2, %v60_v2  ;;  %v83_v7 = vpack.c.bf16 %v58_v3, %v58_v3 }
  0x50   :  { %466 = vmatpush.bf16.xpose.msra.mxu0 %v203_v12 }
  0x51   :  { %492 = vmatpush.bf16.xpose.msra.mxu2 %v205_v13 }
  0x52   :  { %505 = vmatpush.bf16.xpose.msra.mxu3 %v206_v14  ;;  %479 = vmatpush.bf16.xpose.msra.mxu1 %v204_v15 }
  0x57   :  { %467 = vmatmul.bf16.vlgmr.msra.gmra.mxu0 %v78_v55 }
  0x58   :  { %517 = vmatpush.bf16.xpose.msrb.mxu0 %v232_v32  ;;  %493 = vmatmul.bf16.vlgmr.msra.gmra.mxu2 %v80_v56 }
  0x59   :  { %543 = vmatpush.bf16.xpose.msrb.mxu2 %v234_v33  ;;  %506 = vmatmul.bf16.vlgmr.msra.gmra.mxu3 %v81_v57 }
  0x5a   :  { %556 = vmatpush.bf16.xpose.msrb.mxu3 %v235_v34  ;;  %530 = vmatpush.bf16.xpose.msrb.mxu1 %v233_v35 }
  0x5b   :  { %480 = vmatmul.bf16.vlgmr.msra.gmra.mxu1 %v79_v58 }
  0x60   :  { %518 = vmatpush.bf16.xpose.msrb.mxu0 %v207_v44 }
  0x61   :  { %544 = vmatpush.bf16.xpose.msrb.mxu2 %v209_v45 }
  0x62   :  { %557 = vmatpush.bf16.xpose.msrb.mxu3 %v210_v46  ;;  %531 = vmatpush.bf16.xpose.msrb.mxu1 %v208_v47  ;;  %v577_v46 = vld [vmem:[%s781_s3] sm:$0xff] }
  0x67   :  { %519 = vmatmul.bf16.vlgmr.msrb.gmra.mxu0 %v82_v4 }
  0x68   :  { %569 = vmatpush.bf16.xpose.msra.mxu0 %v249_v59  ;;  %545 = vmatmul.bf16.vlgmr.msrb.gmra.mxu2 %v84_v5 }
  0x69   :  { %558 = vmatmul.bf16.vlgmr.msrb.gmra.mxu3 %v85_v6 }
  0x6a   :  { %617 = vmatpush.xpose.msk.msra.mxu1 %vm582_vm1, %v577_v46 }
  0x6b   :  { %532 = vmatmul.bf16.vlgmr.msrb.gmra.mxu1 %v83_v7 }
  0x70   :  { %570 = vmatpush.bf16.xpose.msra.mxu0 %v246_v63 }
  0x77   :  { %616 = vmatmul.msk.bf16.vlgmr.msra.gmra.mxu0 %vm241_vm0, %v86_v9 }
  0x94   :  { %v260_v10 = vpop.f32.mrf.mxu0 }
  0x95   :  { %v261_v24 = vadd.f32 %v622_v20, %v260_v10 }
  0x98   :  { %v273_v11 = vpop.f32.mrf.mxu1 }
  0x99   :  { %v274_v26 = vadd.f32 %v273_v11, %v261_v24  ;;  %v623_v24 = vld [vmem:[%s782_s4] ss:$0 sm:$0xff] }
  0x9b   :  { %v286_v12 = vpop.f32.mrf.mxu2 }
  0x9c   :  { %v299_v13 = vpop.f32.mrf.mxu3  ;;  %v262_v14 = vpop.f32.mrf.mxu0  ;;  %v287_v27 = vadd.f32 %v286_v12, %v274_v26 }
  0x9e   :  { %v300_v32 = vadd.f32 %v299_v13, %v287_v27 }
  0xa0   :  { %v275_v15 = vpop.f32.mrf.mxu1 }
  0xa3   :  { %v288_v16 = vpop.f32.mrf.mxu2 }
  0xa4   :  { %v301_v17 = vpop.f32.mrf.mxu3  ;;  %v312_v18 = vpop.f32.mrf.mxu0 }
  0xa5   :  { %v313_v33 = vadd.f32 %v312_v18, %v300_v32 }
  0xa8   :  { %v325_v19 = vpop.f32.mrf.mxu1 }
  0xa9   :  { %v326_v37 = vadd.f32 %v325_v19, %v313_v33 }
  0xab   :  { %v338_v21 = vpop.f32.mrf.mxu2 }
  0xac   :  { %v351_v22 = vpop.f32.mrf.mxu3  ;;  %v314_v23 = vpop.f32.mrf.mxu0  ;;  %v339_v39 = vadd.f32 %v338_v21, %v326_v37 }
  0xae   :  { %v352_v40 = vadd.f32 %v351_v22, %v339_v39 }
  0xb0   :  { %v327_v25 = vpop.f32.mrf.mxu1 }
  0xb3   :  { %v340_v28 = vpop.f32.mrf.mxu2 }
  0xb4   :  { %v353_v29 = vpop.f32.mrf.mxu3  ;;  %v364_v30 = vpop.f32.mrf.mxu0 }
  0xb5   :  { %v365_v44 = vadd.f32 %v364_v30, %v352_v40 }
  0xb8   :  { %v377_v31 = vpop.f32.mrf.mxu1 }
  0xb9   :  { %v378_v47 = vadd.f32 %v377_v31, %v365_v44 }
  0xbb   :  { %v390_v34 = vpop.f32.mrf.mxu2 }
  0xbc   :  { %v403_v35 = vpop.f32.mrf.mxu3  ;;  %v366_v36 = vpop.f32.mrf.mxu0  ;;  %v391_v48 = vadd.f32 %v390_v34, %v378_v47 }
  0xbe   :  { %v404_v53 = vadd.f32 %v403_v35, %v391_v48 }
  0xc0   :  { %v379_v38 = vpop.f32.mrf.mxu1 }
  0xc3   :  { %v392_v41 = vpop.f32.mrf.mxu2 }
  0xc4   :  { %v405_v42 = vpop.f32.mrf.mxu3  ;;  %v416_v43 = vpop.f32.mrf.mxu0 }
  0xc5   :  { %v417_v54 = vadd.f32 %v416_v43, %v404_v53 }
  0xc8   :  { %v429_v45 = vpop.f32.mrf.mxu1 }
  0xc9   :  { %v430_v58 = vadd.f32 %v429_v45, %v417_v54 }
  0xcb   :  { %v442_v49 = vpop.f32.mrf.mxu2 }
  0xcc   :  { %v455_v50 = vpop.f32.mrf.mxu3  ;;  %v418_v51 = vpop.f32.mrf.mxu0  ;;  %v443_v60 = vadd.f32 %v442_v49, %v430_v58 }
  0xce   :  { %v456_v61 = vadd.f32 %v455_v50, %v443_v60 }
  0xd0   :  { %v431_v52 = vpop.f32.mrf.mxu1 }
  0xd3   :  { %v444_v55 = vpop.f32.mrf.mxu2 }
  0xd4   :  { %v457_v56 = vpop.f32.mrf.mxu3  ;;  %v468_v57 = vpop.f32.mrf.mxu0 }
  0xd5   :  { %v469_v1 = vadd.f32 %v468_v57, %v456_v61 }
  0xd8   :  { %v481_v59 = vpop.f32.mrf.mxu1 }
  0xd9   :  { %v482_v3 = vadd.f32 %v481_v59, %v469_v1 }
  0xdb   :  { %v494_v62 = vpop.f32.mrf.mxu2 }
  0xdc   :  { %v507_v63 = vpop.f32.mrf.mxu3  ;;  %v470_v0 = vpop.f32.mrf.mxu0  ;;  %v495_v4 = vadd.f32 %v494_v62, %v482_v3 }
  0xde   :  { %v508_v9 = vadd.f32 %v507_v63, %v495_v4 }
  0xe0   :  { %v483_v2 = vpop.f32.mrf.mxu1 }
  0xe3   :  { %v496_v5 = vpop.f32.mrf.mxu2 }
  0xe4   :  { %v509_v6 = vpop.f32.mrf.mxu3  ;;  %v520_v7 = vpop.f32.mrf.mxu0 }
  0xe5   :  { %v521_v10 = vadd.f32 %v520_v7, %v508_v9 }
  0xe8   :  { %v533_v8 = vpop.f32.mrf.mxu1 }
  0xe9   :  { %v534_v14 = vadd.f32 %v533_v8, %v521_v10 }
  0xeb   :  { %v546_v11 = vpop.f32.mrf.mxu2 }
  0xec   :  { %v559_v12 = vpop.f32.mrf.mxu3  ;;  %v522_v13 = vpop.f32.mrf.mxu0  ;;  %v547_v16 = vadd.f32 %v546_v11, %v534_v14 }
  0xee   :  { %v560_v17 = vadd.f32 %v559_v12, %v547_v16 }
  0xf0   :  { %v535_v15 = vpop.f32.mrf.mxu1 }
  0xf3   :  { %v548_v18 = vpop.f32.mrf.mxu2 }
  0xf4   :  { %v561_v19 = vpop.f32.mrf.mxu3  ;;  %v572_v20 = vpop.f32.mrf.mxu0 }
  0xf5   :  { %v573_v21 = vadd.f32 %v572_v20, %v560_v17 }
  0xf7   :  { %v576_v22 = vmax.f32 %v573_v21, 0.0 }
  0xf9   :  { %618 = vmatmul.msk.f32.vlgmr.msra.gmra.mxu1 %vm582_vm1, %v576_v22 }
  0xfc   :  { %v574_v23 = vpop.f32.mrf.mxu0 }
 0x176   :  { %v606_v25 = vpop.f32.mrf.mxu1 }
 0x177   :  { %v607_v26 = vadd.f32 %v623_v24, %v606_v25 }
 0x179   :  { %610 = vst.msk [vmem:[%s783_s5] sm:$0xff] %vm609_vm2, %v607_v26 }
 0x17a   :  { %615 = vsyncpa [#allocation3], 1 }

</bundles_post_ra>
